<compile_context>
chip_gen: v5e
topology: v5e:2x2
jax: 0.10.0
libtpu: 0.0.40
codegen_flags: <defaults>
</compile_context>

<pallas_src>
import functools

import jax
import jax.numpy as jnp
from jax.experimental import pallas as pl
from jax.experimental.pallas import tpu as pltpu


def _cdiv(a, b):
    return -(-a // b)


def _recon_mix_cls_kernel(old_ref, new_ref, pred_ref, labels_ref, out_ref,
                          acc_ref, *, alpha, inv_n_recon, inv_n_rows,
                          tile_rows, lanes, acc_rows, valid_rows):
    c = pl.program_id(0)            # shard (TensorCore) index
    i = pl.program_id(1)            # step within shard
    nsteps = pl.num_programs(1)

    @pl.when(i == 0)
    def _init():
        acc_ref[...] = jnp.zeros_like(acc_ref)

    # ---- streaming squared error (per tile) ----
    diff = old_ref[...].astype(jnp.float32) - new_ref[...].astype(jnp.float32)
    sq = diff * diff                                        # (tile_rows, lanes)

    # Mask rows past the true row count (ragged last tile and the clamped
    # overhang tile of the shard split).  Pure VPU work; free under DMA time.
    row_start = (c * nsteps + i) * tile_rows
    row_idx = jax.lax.broadcasted_iota(jnp.int32, (tile_rows, lanes), 0)
    sq = jnp.where(row_idx < (valid_rows - row_start), sq, 0.0)

    # Accumulate into a tall (acc_rows, lanes) scratch: independent vreg adds,
    # no long dependent chain.  The single cross-lane reduce is in finalize.
    if tile_rows == acc_rows:
        acc_ref[...] += sq
    else:
        acc_ref[...] += jnp.sum(
            sq.reshape(tile_rows // acc_rows, acc_rows, lanes), axis=0)

    # ---- per-shard finalize: normalized partial sum-of-squares ----
    @pl.when(i == nsteps - 1)
    def _partial():
        out_ref[0, 0] = jnp.sum(acc_ref[...]) * inv_n_recon

    # ---- tiny cross-entropy term: computed exactly once, on shard 0 ----
    @pl.when((i == nsteps - 1) & (c == 0))
    def _cls():
        logits = pred_ref[...].astype(jnp.float32)          # (N, C) resident
        m = jnp.max(logits, axis=-1, keepdims=True)
        lse = jnp.log(jnp.sum(jnp.exp(logits - m), axis=-1, keepdims=True)) + m

        labels = labels_ref[...]                            # (N, 1) int32 resident
        col_ids = jax.lax.broadcasted_iota(jnp.int32, logits.shape, 1)
        picked = jnp.sum(jnp.where(col_ids == labels, logits, 0.0),
                         axis=-1, keepdims=True)            # (N, 1)

        ce = jnp.sum(lse - picked) * inv_n_rows
        out_ref[0, 0] = out_ref[0, 0] + alpha * ce


def recon_mix_cls(x, alpha, *, max_tile_rows=1024, num_shards=2):
    """x: dict with 'old_values', 'new_values' (same shape, float),
    'predicted' (N, C) float logits, 'labels' (N,) int labels."""
    old = x['old_values']
    new = x['new_values']
    predicted = x['predicted']
    labels = x['labels']

    n = old.size
    n_cls_rows, n_cls = predicted.shape

    # --- lane-dense slab in native dtype; free reshape, NO pad copy, whenever
    # numel is a multiple of 128 (the common case). ---
    lanes = None
    for cand in (512, 256, 128):
        if n % cand == 0:
            lanes = cand
            break
    old1 = old.reshape(-1)
    new1 = new.reshape(-1)
    if lanes is None:
        # TODO(synk): rare fallback (numel not a multiple of 128) still pays a
        # pad copy; a fully pad-free path would need a narrow-lane tail pass.
        lanes = 128
        pad = (-n) % lanes
        old1 = jnp.pad(old1, (0, pad))
        new1 = jnp.pad(new1, (0, pad))
    rows = old1.size // lanes
    old2d = old1.reshape(rows, lanes)
    new2d = new1.reshape(rows, lanes)

    labels2d = labels.astype(jnp.int32).reshape(-1, 1)

    # --- tiling: ragged tail handled in-kernel, no row padding ---
    if rows <= max_tile_rows:
        tile_rows = rows                      # full-extent block (always legal)
        n_blocks = 1
    else:
        tile_rows = max_tile_rows             # 1024: multiple of 8 (and 64)
        n_blocks = _cdiv(rows, tile_rows)

    shards = num_shards if n_blocks >= num_shards else 1
    steps_per_shard = _cdiv(n_blocks, shards)
    last_block = n_blocks - 1

    if tile_rows % 64 == 0:
        acc_rows = 64
    elif tile_rows % 8 == 0:
        acc_rows = 8
    else:
        acc_rows = tile_rows

    kernel = functools.partial(
        _recon_mix_cls_kernel,
        alpha=float(alpha),
        inv_n_recon=1.0 / float(n),
        inv_n_rows=1.0 / float(n_cls_rows),
        tile_rows=tile_rows,
        lanes=lanes,
        acc_rows=acc_rows,
        valid_rows=rows,
    )

    def _recon_index(c, i):
        # Clamp so the overhang step of the shard split never DMAs out of
        # bounds; the kernel's row mask zeroes its contribution.
        return (jnp.minimum(c * steps_per_shard + i, last_block), 0)

    def _nbytes(a):
        return a.size * a.dtype.itemsize

    cost = pl.CostEstimate(
        flops=3 * n + 8 * predicted.size,
        transcendentals=predicted.size,
        bytes_accessed=(_nbytes(old2d) + _nbytes(new2d)
                        + _nbytes(predicted) + _nbytes(labels2d) + 4 * shards),
    )

    out = pl.pallas_call(
        kernel,
        out_shape=jax.ShapeDtypeStruct((shards, 1), jnp.float32),
        grid=(shards, steps_per_shard),
        in_specs=[
            # streamed, pipelined reconstruction tiles
            pl.BlockSpec((tile_rows, lanes), _recon_index),
            pl.BlockSpec((tile_rows, lanes), _recon_index),
            # tiny classification inputs: constant block index -> resident
            pl.BlockSpec((n_cls_rows, n_cls), lambda c, i: (0, 0)),
            pl.BlockSpec((n_cls_rows, 1), lambda c, i: (0, 0)),
        ],
        out_specs=pl.BlockSpec((1, 1), lambda c, i: (c, 0),
                               memory_space=pltpu.SMEM),
        scratch_shapes=[pltpu.VMEM((acc_rows, lanes), jnp.float32)],
        compiler_params=pltpu.CompilerParams(
            dimension_semantics=("parallel", "arbitrary"),
            vmem_limit_bytes=32 * 1024 * 1024),
        cost_estimate=cost,
    )(old2d, new2d, predicted, labels2d)

    # Per-shard partials are already normalized; shard 0 carries alpha*CE.
    return jnp.sum(out)


def _reference(x, alpha):
    old = x['old_values'].astype(jnp.float32)
    new = x['new_values'].astype(jnp.float32)
    mse = jnp.mean((old - new) ** 2)
    logits = x['predicted'].astype(jnp.float32)
    labels = x['labels'].astype(jnp.int32)
    logp = jax.nn.log_softmax(logits, axis=-1)
    ce = -jnp.mean(jnp.take_along_axis(logp, labels[:, None], axis=-1))
    return mse + alpha * ce


if __name__ == "__main__":
    key = jax.random.PRNGKey(0)
    k1, k2, k3, k4 = jax.random.split(key, 4)

    B, C, H, W = 2, 4, 16, 16       # reconstruction tensors (NCHW)
    N, NCLS = 8, 32                 # classification logits / labels
    alpha = 0.5

    x = {
        'old_values': jax.random.normal(k1, (B, C, H, W), dtype=jnp.float32),
        'new_values': jax.random.normal(k2, (B, C, H, W), dtype=jnp.float32),
        'predicted': jax.random.normal(k3, (N, NCLS), dtype=jnp.float32),
        'labels': jax.random.randint(k4, (N,), 0, NCLS, dtype=jnp.int32),
    }

    loss = recon_mix_cls(x, alpha)
    loss = jax.block_until_ready(loss)

    ref = _reference(x, alpha)
    assert jnp.allclose(loss, ref, rtol=1e-5, atol=1e-5), (loss, ref)

    print("KERNEL_OK")
</pallas_src>

<mosaic_0001>
module attributes {stable_mosaic.version = 11 : i64} {
  func.func @_recon_mix_cls_kernel(%arg0: i32, %arg1: i32, %arg2: memref<4x512xf32, #tpu.memory_space<vmem>>, %arg3: memref<4x512xf32, #tpu.memory_space<vmem>>, %arg4: memref<8x32xf32, #tpu.memory_space<vmem>>, %arg5: memref<8x1xi32, #tpu.memory_space<vmem>>, %arg6: memref<1x1xf32, #tpu.memory_space<smem>>, %arg7: memref<4x512xf32, #tpu.memory_space<vmem>>) attributes {dimension_semantics = [#tpu.dimension_semantics<parallel>, #tpu.dimension_semantics<arbitrary>], iteration_bounds = array<i64: 1, 1>, scalar_prefetch = 0 : i64, scratch_operands = 1 : i64, tpu.core_type = #tpu.core_type<tc>, window_params = [{transform_indices = @transform_0, window_bounds = array<i64: 4, 512>}, {transform_indices = @transform_1, window_bounds = array<i64: 4, 512>}, {pipeline_mode = #tpu.pipeline_mode<synchronous>, transform_indices = @transform_2, window_bounds = array<i64: 8, 32>}, {pipeline_mode = #tpu.pipeline_mode<synchronous>, transform_indices = @transform_3, window_bounds = array<i64: 8, 1>}, {transform_indices = @transform_4, window_bounds = array<i64: 1, 1>}]} {
    %c0_i32 = arith.constant 0 : i32
    %0 = arith.cmpi eq, %arg1, %c0_i32 : i32
    %1 = arith.extui %0 : i1 to i32
    %c0_i32_0 = arith.constant 0 : i32
    %2 = arith.cmpi ne, %1, %c0_i32_0 : i32
    scf.if %2 {
      %cst_14 = arith.constant 0.000000e+00 : f32
      %27 = vector.broadcast %cst_14 : f32 to vector<4x512xf32>
      %c0_15 = arith.constant 0 : index
      %c0_16 = arith.constant 0 : index
      %28 = vector.load %arg7[%c0_15, %c0_16] : memref<4x512xf32, #tpu.memory_space<vmem>>, vector<4x512xf32>
      tpu.vector_store %arg7[%c0_15, %c0_16], %27 {strides = array<i32>} : memref<4x512xf32, #tpu.memory_space<vmem>>, vector<4x512xf32>,
    } else {
    }
    %c0 = arith.constant 0 : index
    %c0_1 = arith.constant 0 : index
    %3 = vector.load %arg2[%c0, %c0_1] : memref<4x512xf32, #tpu.memory_space<vmem>>, vector<4x512xf32>
    %c0_2 = arith.constant 0 : index
    %c0_3 = arith.constant 0 : index
    %4 = vector.load %arg3[%c0_2, %c0_3] : memref<4x512xf32, #tpu.memory_space<vmem>>, vector<4x512xf32>
    %5 = arith.subf %3, %4 : vector<4x512xf32>
    %6 = arith.mulf %5, %5 : vector<4x512xf32>
    %c1_i32 = arith.constant 1 : i32
    %7 = arith.muli %arg0, %c1_i32 : i32
    %8 = arith.addi %7, %arg1 : i32
    %c4_i32 = arith.constant 4 : i32
    %9 = arith.muli %8, %c4_i32 : i32
    %10 = tpu.iota {dimensions = array<i32: 0>} : vector<4x512xi32>
    %c4_i32_4 = arith.constant 4 : i32
    %11 = arith.subi %c4_i32_4, %9 : i32
    %12 = vector.broadcast %11 : i32 to vector<4x512xi32>
    %13 = arith.cmpi slt, %10, %12 : vector<4x512xi32>
    %cst = arith.constant 0.000000e+00 : f32
    %14 = vector.broadcast %cst : f32 to vector<4x512xf32>
    %15 = arith.select %13, %6, %14 : vector<4x512xi1>, vector<4x512xf32>
    %c0_5 = arith.constant 0 : index
    %c0_6 = arith.constant 0 : index
    %16 = vector.load %arg7[%c0_5, %c0_6] : memref<4x512xf32, #tpu.memory_space<vmem>>, vector<4x512xf32>
    %17 = arith.addf %16, %15 : vector<4x512xf32>
    %c0_7 = arith.constant 0 : index
    %c0_8 = arith.constant 0 : index
    %18 = vector.load %arg7[%c0_7, %c0_8] : memref<4x512xf32, #tpu.memory_space<vmem>>, vector<4x512xf32>
    tpu.vector_store %arg7[%c0_7, %c0_8], %17 {strides = array<i32>} : memref<4x512xf32, #tpu.memory_space<vmem>>, vector<4x512xf32>,
    %c0_i32_9 = arith.constant 0 : i32
    %19 = arith.cmpi eq, %arg1, %c0_i32_9 : i32
    %20 = arith.extui %19 : i1 to i32
    %c0_i32_10 = arith.constant 0 : i32
    %21 = arith.cmpi ne, %20, %c0_i32_10 : i32
    scf.if %21 {
      %c0_14 = arith.constant 0 : index
      %c0_15 = arith.constant 0 : index
      %27 = vector.load %arg7[%c0_14, %c0_15] : memref<4x512xf32, #tpu.memory_space<vmem>>, vector<4x512xf32>
      %28 = vector.shape_cast %27 : vector<4x512xf32> to vector<1x4x512xf32>
      %cst_16 = arith.constant dense<0.000000e+00> : vector<1xf32>
      %29 = vector.multi_reduction <add>, %28, %cst_16 [1, 2] : vector<1x4x512xf32> to vector<1xf32>
      %30 = vector.shape_cast %29 : vector<1xf32> to vector<1x1x1xf32>
      %31 = vector.extract %30[0, 0, 0] : f32 from vector<1x1x1xf32>
      %cst_17 = arith.constant 4.8828125E-4 : f32
      %32 = arith.mulf %31, %cst_17 : f32
      %c0_18 = arith.constant 0 : index
      %c0_19 = arith.constant 0 : index
      %33 = memref.load %arg6[%c0_18, %c0_19] : memref<1x1xf32, #tpu.memory_space<smem>>
      memref.store %32, %arg6[%c0_18, %c0_19] : memref<1x1xf32, #tpu.memory_space<smem>>
    } else {
    }
    %c0_i32_11 = arith.constant 0 : i32
    %22 = arith.cmpi eq, %arg1, %c0_i32_11 : i32
    %c0_i32_12 = arith.constant 0 : i32
    %23 = arith.cmpi eq, %arg0, %c0_i32_12 : i32
    %24 = arith.andi %22, %23 : i1
    %25 = arith.extui %24 : i1 to i32
    %c0_i32_13 = arith.constant 0 : i32
    %26 = arith.cmpi ne, %25, %c0_i32_13 : i32
    scf.if %26 {
      %c0_14 = arith.constant 0 : index
      %c0_15 = arith.constant 0 : index
      %27 = vector.load %arg4[%c0_14, %c0_15] : memref<8x32xf32, #tpu.memory_space<vmem>>, vector<8x32xf32>
      %cst_16 = arith.constant dense<0xFF800000> : vector<8xf32>
      %28 = vector.multi_reduction <maximumf>, %27, %cst_16 [1] : vector<8x32xf32> to vector<8xf32>
      %29 = vector.shape_cast %28 : vector<8xf32> to vector<8x1xf32>
      %30 = vector.broadcast %29 : vector<8x1xf32> to vector<8x32xf32>
      %31 = arith.subf %27, %30 : vector<8x32xf32>
      %32 = math.exp %31 : vector<8x32xf32>
      %cst_17 = arith.constant dense<0.000000e+00> : vector<8xf32>
      %33 = vector.multi_reduction <add>, %32, %cst_17 [1] : vector<8x32xf32> to vector<8xf32>
      %34 = vector.shape_cast %33 : vector<8xf32> to vector<8x1xf32>
      %35 = math.log %34 : vector<8x1xf32>
      %36 = arith.addf %35, %29 : vector<8x1xf32>
      %c0_18 = arith.constant 0 : index
      %c0_19 = arith.constant 0 : index
      %37 = vector.load %arg5[%c0_18, %c0_19] : memref<8x1xi32, #tpu.memory_space<vmem>>, vector<8x1xi32>
      %38 = tpu.iota {dimensions = array<i32: 1>} : vector<8x32xi32>
      %39 = vector.broadcast %37 : vector<8x1xi32> to vector<8x32xi32>
      %40 = arith.cmpi eq, %38, %39 : vector<8x32xi32>
      %cst_20 = arith.constant 0.000000e+00 : f32
      %41 = vector.broadcast %cst_20 : f32 to vector<8x32xf32>
      %42 = arith.select %40, %27, %41 : vector<8x32xi1>, vector<8x32xf32>
      %cst_21 = arith.constant dense<0.000000e+00> : vector<8xf32>
      %43 = vector.multi_reduction <add>, %42, %cst_21 [1] : vector<8x32xf32> to vector<8xf32>
      %44 = vector.shape_cast %43 : vector<8xf32> to vector<8x1xf32>
      %45 = arith.subf %36, %44 : vector<8x1xf32>
      %46 = vector.shape_cast %45 : vector<8x1xf32> to vector<1x8x1xf32>
      %cst_22 = arith.constant dense<0.000000e+00> : vector<1xf32>
      %47 = vector.multi_reduction <add>, %46, %cst_22 [1, 2] : vector<1x8x1xf32> to vector<1xf32>
      %48 = vector.shape_cast %47 : vector<1xf32> to vector<1x1x1xf32>
      %49 = vector.extract %48[0, 0, 0] : f32 from vector<1x1x1xf32>
      %cst_23 = arith.constant 1.250000e-01 : f32
      %50 = arith.mulf %49, %cst_23 : f32
      %c0_24 = arith.constant 0 : index
      %c0_25 = arith.constant 0 : index
      %51 = memref.load %arg6[%c0_24, %c0_25] : memref<1x1xf32, #tpu.memory_space<smem>>
      %cst_26 = arith.constant 5.000000e-01 : f32
      %52 = arith.mulf %cst_26, %50 : f32
      %53 = arith.addf %51, %52 : f32
      %c0_27 = arith.constant 0 : index
      %c0_28 = arith.constant 0 : index
      %54 = memref.load %arg6[%c0_27, %c0_28] : memref<1x1xf32, #tpu.memory_space<smem>>
      memref.store %53, %arg6[%c0_27, %c0_28] : memref<1x1xf32, #tpu.memory_space<smem>>
    } else {
    }
    return
  }
  func.func @transform_0(%arg0: i32, %arg1: i32) -> (i32, i32) {
    %c1_i32 = arith.constant 1 : i32
    %0 = arith.muli %arg0, %c1_i32 : i32
    %1 = arith.addi %0, %arg1 : i32
    %c0_i32 = arith.constant 0 : i32
    %2 = arith.minsi %1, %c0_i32 : i32
    %c0_i32_0 = arith.constant 0 : i32
    %c0_i32_1 = arith.constant 0 : i32
    return %2, %c0_i32_0 : i32, i32
  }
  func.func @transform_1(%arg0: i32, %arg1: i32) -> (i32, i32) {
    %c1_i32 = arith.constant 1 : i32
    %0 = arith.muli %arg0, %c1_i32 : i32
    %1 = arith.addi %0, %arg1 : i32
    %c0_i32 = arith.constant 0 : i32
    %2 = arith.minsi %1, %c0_i32 : i32
    %c0_i32_0 = arith.constant 0 : i32
    %c0_i32_1 = arith.constant 0 : i32
    return %2, %c0_i32_0 : i32, i32
  }
  func.func @transform_2(%arg0: i32, %arg1: i32) -> (i32, i32) {
    %c0_i32 = arith.constant 0 : i32
    %c0_i32_0 = arith.constant 0 : i32
    %c0_i32_1 = arith.constant 0 : i32
    return %c0_i32, %c0_i32_0 : i32, i32
  }
  func.func @transform_3(%arg0: i32, %arg1: i32) -> (i32, i32) {
    %c0_i32 = arith.constant 0 : i32
    %c0_i32_0 = arith.constant 0 : i32
    %c0_i32_1 = arith.constant 0 : i32
    return %c0_i32, %c0_i32_0 : i32, i32
  }
  func.func @transform_4(%arg0: i32, %arg1: i32) -> (i32, i32) {
    %c0_i32 = arith.constant 0 : i32
    %c0_i32_0 = arith.constant 0 : i32
    return %arg0, %c0_i32 : i32, i32
  }
}

</mosaic_0001>

<bundles_post_ra>
// kernel: tpu_custom_call.1
= control target key start
LH: loop header
LB: loop body
LE: loop exit
PB: predicated region body
PF: predicated region fallthrough
CT: control target
= control target key end

     0   :  { %9 = vsyncpa [#allocation4], 0  ;;  %s351_s0 = inlined_call_operand.hbm [shape: f32[4,512], index: 0, kind: input, shape index: {}]   ;;  %s352_s1 = inlined_call_operand.hbm [shape: f32[4,512], index: 1, kind: input, shape index: {}]   ;;  %s353_s2 = inlined_call_operand.vmem [shape: f32[8,32], index: 2, kind: input, shape index: {}]   ;;  %s354_s3 = inlined_call_operand.vmem [shape: s32[8,1], index: 3, kind: input, shape index: {}]   ;;  %s355_s4 = inlined_call_operand.hbm [shape: f32[1,1], index: 4, kind: output, shape index: {}]  }
   0x1   :  { %10 = vsyncpa [#allocation7], 0 }
   0x2   :  { %11 = vsyncpa [#allocation5], 0  ;;  %s23_s17 = sshll.u32 %s351_s0, 4  ;;  %s304_s18 = smov [#allocation3]   ;;  %s24_s17 = int_to_ptr.hbm [resolvable:$true] %s23_s17 }
   0x3   :  { %s25_s19 = sshll.u32 %s304_s18, 4  ;;  %s40_s22 = sshll.u32 %s352_s1, 4  ;;  %s26_s19 = int_to_ptr.vmem [resolvable:$true] %s25_s19  ;;  %s41_s22 = int_to_ptr.hbm [resolvable:$true] %s40_s22 }
   0x4   :  { %28 = dma.hbm_to_vmem [thread:$0]  %s24_s17, 256, %s26_s19, [#allocation4]  }
   0x5   :  { %s305_s23 = smov [#allocation6]  }
   0x6   :  { %s42_s24 = sshll.u32 %s305_s23, 4  ;;  %s43_s24 = int_to_ptr.vmem [resolvable:$true] %s42_s24 }
   0x7   :  { %45 = dma.hbm_to_vmem [thread:$0]  %s41_s22, 256, %s43_s24, [#allocation7]  }
   0x8   :  { %298 = dma.done.wait [#allocation4], 256  }
   0x9   :  { %299 = vsyncadd [#allocation4], 4294967040 }
   0xa   :  { %300 = dma.done.wait [#allocation7], 256  }
   0xb   :  { %301 = vsyncadd [#allocation7], 4294967040  ;;  %v306_v0 = vmov 0   ;;  %vm162_vm0 = vcmask 261120   ;;  %v161_v1 = vld [vmem:[%s353_s2] sm:$0xff]  ;;  %v70_v4 = vld [vmem:[#allocation3] sm:$0xff]  ;;  %v80_v17 = vlaneseq }
   0xc   :  { %233 = vset.pattern.permute.xlu0 %v306_v0  ;;  %v163_v2 = vsel %vm162_vm0, %v161_v1, -inf  ;;  %v175_v3 = vld [vmem:[%s354_s3] sm:$0xff]  ;;  %v71_v5 = vld [vmem:[#allocation3 + $0x8] sm:$0xff]  ;;  %v72_v6 = vld [vmem:[#allocation6] sm:$0xff]  ;;  %vm110_vm3 = vcmask 1043456   ;;  %vm187_vm4 = vcmask 7168  }
   0xd   :  { %164 = vmax.xlane.f32.xlu0 %v163_v2  ;;  %v73_v7 = vld [vmem:[#allocation6 + $0x8] sm:$0xff]  ;;  %v74_v8 = vsub.f32 %v70_v4, %v72_v6  ;;  %v177_v18 = vand.u32 127, %v80_v17  ;;  %v81_v22 = vshrl.u32 %v80_v17, 7  ;;  %s209_s30 = sshll.u32 %s355_s4, 4  ;;  %s307_s8 = smov [#allocation8]   ;;  %s210_s30 = int_to_ptr.hbm [resolvable:$true] %s209_s30 }
   0xe   :  { %v75_v9 = vsub.f32 %v71_v5, %v73_v7 }
   0xf   :  { %v76_v10 = vmul.f32 %v74_v8, %v74_v8  ;;  %vm84_vm2 = vcmp.lt.s32.totalorder %v81_v22, 4 }
  0x10   :  { %v77_v11 = vmul.f32 %v75_v9, %v75_v9 }
  0x11   :  { %87 = vst [vmem:[#allocation1] ss:$2 sm:$0xff] %v76_v10 }
  0x12   :  { %89 = vst [vmem:[#allocation1 + $0x10] ss:$2 sm:$0xff] %v77_v11 }
  0x18   :  { %v91_v23 = vld.sshfl [vmem:[#allocation1 + $0x8] sm:$0xff pattern:$0x75316420]  ;;  %v90_v26 = vld.sshfl [vmem:[#allocation1] sm:$0xff pattern:$0x75316420] }
  0x19   :  { %v93_v24 = vld.sshfl [vmem:[#allocation1 + $0x18] sm:$0xff pattern:$0x75316420]  ;;  %v99_v25 = vsel %vm84_vm2, %v91_v23, 0.0  ;;  %v98_v30 = vsel %vm84_vm2, %v90_v26, 0.0 }
  0x1a   :  { %v101_v27 = vsel %vm84_vm2, %v93_v24, 0.0  ;;  %v92_v28 = vld.sshfl [vmem:[#allocation1 + $0x10] sm:$0xff pattern:$0x75316420]  ;;  %v108_v29 = vrot.slane %v99_v25, 4 }
  0x1b   :  { %v109_v31 = vrot.slane %v101_v27, 4  ;;  %v100_v32 = vsel %vm84_vm2, %v92_v28, 0.0 }
  0x1c   :  { %v111_v33 = vsel %vm110_vm3, %v98_v30, %v108_v29 }
  0x1d   :  { %126 = vst [vmem:[#allocation1] ss:$2 sm:$0xff] %v111_v33  ;;  %v112_v34 = vsel %vm110_vm3, %v100_v32, %v109_v31 }
  0x1e   :  { %128 = vst [vmem:[#allocation1 + $0x10] ss:$2 sm:$0xff] %v112_v34 }
  0x21   :  { %179 = vperm.xlu0 %233, %v175_v3  }
  0x24   :  { %v129_v35 = vld.sshfl [vmem:[#allocation1] sm:$0xff pattern:$0x75316420]  ;;  %v130_v36 = vld.sshfl [vmem:[#allocation1 + $0x8] sm:$0xff pattern:$0x75316420] }
  0x25   :  { %v137_v37 = vsel %vm110_vm3, %v129_v35, 0.0  ;;  %v138_v38 = vsel %vm110_vm3, %v130_v36, 0.0  ;;  %v131_v39 = vld.sshfl [vmem:[#allocation1 + $0x10] sm:$0xff pattern:$0x75316420] }
  0x26   :  { %v139_v40 = vadd.f32 %v138_v38, %v137_v37  ;;  %v140_v41 = vsel %vm110_vm3, %v131_v39, 0.0  ;;  %v132_v42 = vld.sshfl [vmem:[#allocation1 + $0x18] sm:$0xff pattern:$0x75316420] }
  0x27   :  { %v142_v44 = vsel %vm110_vm3, %v132_v42, 0.0 }
  0x28   :  { %v141_v43 = vadd.f32 %v140_v41, %v139_v40 }
  0x2a   :  { %v143_v45 = vadd.f32 %v142_v44, %v141_v43 }
  0x2c   :  { %144 = vadd.xlane.f32.xlu2 %v143_v45 }
  0x80   :  { %v165_v12 = vpop.xlane.xlu0 %164 }
  0x81   :  { %v166_v13 = vsub.f32 %v161_v1, %v165_v12 }
  0x83   :  { %v167_v14 = vmul.f32 1.442695, %v166_v13 }
  0x85   :  { %234 = vpow2.f32 %v167_v14 }
  0x8b   :  { %v235_v15 = vpop.eup %234 }
  0x8c   :  { %v169_v16 = vsel %vm162_vm0, %v235_v15, 0.0 }
  0x8d   :  { %170 = vadd.xlane.f32.xlu1 %v169_v16 }
  0x93   :  { %v180_v19 = vpop.permute.xlu0 %179 }
  0x94   :  { %vm181_vm1 = vcmp.eq.s32.totalorder %v177_v18, %v180_v19 }
  0x95   :  { %v182_v20 = vsel %vm181_vm1, %v161_v1, 0.0 }
  0x96   :  { %v183_v21 = vsel %vm162_vm0, %v182_v20, 0.0 }
  0x97   :  { %184 = vadd.xlane.f32.xlu1 %v183_v21 }
  0x9f   :  { %v145_v53 = vpop.xlane.xlu2 %144 }
  0xa0   :  { %v146_v54 = vrot.slane %v145_v53, 4 }
  0xa2   :  { %v147_v55 = vadd.f32 %v146_v54, %v145_v53 }
  0xa4   :  { %v148_v56 = vrot.slane %v147_v55, 2 }
  0xa6   :  { %v149_v57 = vadd.f32 %v148_v56, %v147_v55 }
  0xa8   :  { %v150_v58 = vrot.slane %v149_v57, 1 }
  0xaa   :  { %v151_v59 = vadd.f32 %v150_v58, %v149_v57 }
  0xac   :  { %225 = vpush %v151_v59 }
  0xdd   :  { %s226_s2 = spop %225 }
  0xde   :  { %s153_s5 = smul.f32 0.00048828125, %s226_s2 }
 0x100   :  { %v171_v46 = vpop.xlane.xlu1 %170 }
 0x101   :  { %236 = vlog2.f32 %v171_v46 }
 0x107   :  { %v237_v47 = vpop.eup %236 }
 0x108   :  { %v173_v48 = vmul.f32 0.6931472, %v237_v47 }
 0x10a   :  { %v174_v49 = vadd.f32 %v173_v48, %v165_v12  ;;  %v185_v50 = vpop.xlane.xlu1 %184 }
 0x10c   :  { %v186_v51 = vsub.f32 %v174_v49, %v185_v50 }
 0x10e   :  { %v188_v52 = vsel %vm187_vm4, %v186_v51, 0.0 }
 0x10f   :  { %189 = vadd.xlane.f32.xlu2 %v188_v52 }
 0x182   :  { %v190_v60 = vpop.xlane.xlu2 %189 }
 0x183   :  { %v191_v61 = vrot.slane %v190_v60, 4 }
 0x185   :  { %v192_v62 = vadd.f32 %v191_v61, %v190_v60 }
 0x187   :  { %v193_v63 = vrot.slane %v192_v62, 2 }
 0x189   :  { %v194_v0 = vadd.f32 %v193_v63, %v192_v62 }
 0x18b   :  { %v195_v1 = vrot.slane %v194_v0, 1 }
 0x18d   :  { %v196_v2 = vadd.f32 %v195_v1, %v194_v0 }
 0x18f   :  { %227 = vpush %v196_v2 }
 0x1c0   :  { %s228_s3 = spop %227 }
 0x1c1   :  { %s198_s27 = smul.f32 0.125, %s228_s3 }
 0x1c3   :  { %s200_s6 = smul.f32 0.5, %s198_s27 }
 0x1c5   :  { %s201_s7 = sadd.f32 %s200_s6, %s153_s5 }
 0x1c7   :  { %203 = sst [smem:[#allocation8]] %s201_s7 }
 0x1c8   :  { %212 = dma.smem_to_hbm %s307_s8, 16, %s210_s30, [#allocation5]  }
 0x1c9   :  { %302 = dma.done.wait [#allocation5], 16  }
 0x1ca   :  { %303 = vsyncadd [#allocation5], 4294967280 }
 0x1cb   :  { %217 = sfence }
 0x1cc   :  { %218 = vsyncpa [#allocation4], 1 }
 0x1cd   :  { %219 = vsyncpa [#allocation7], 1 }
 0x1ce   :  { %220 = vsyncpa [#allocation5], 1 }

</bundles_post_ra>
